<compile_context>
chip_gen: v7x
topology: tpu7x:2x2x1
jax: 0.10.0
libtpu: 0.0.40
codegen_flags: <defaults>
</compile_context>

<pallas_src>
import math

import jax
import jax.numpy as jnp
from jax.experimental import pallas as pl
from jax.experimental.pallas import tpu as pltpu


def make_pe_buffer(d_model: int, max_len: int = 5000) -> jnp.ndarray:
    """Deterministic buffer setup (mirrors nn.Module.__init__). Plain JAX glue."""
    assert d_model % 2 == 0, "d_model must be even (same constraint as the PyTorch module)"
    position = jnp.arange(max_len, dtype=jnp.float32)[:, None]            # (max_len, 1)
    div_term = jnp.exp(
        jnp.arange(0, d_model, 2, dtype=jnp.float32) * (-math.log(10000.0) / d_model)
    )                                                                     # (d_model//2,)
    pe = jnp.zeros((max_len, d_model), dtype=jnp.float32)
    pe = pe.at[:, 0::2].set(jnp.sin(position * div_term))
    pe = pe.at[:, 1::2].set(jnp.cos(position * div_term))
    return pe[None, :, :]                                                 # (1, max_len, d_model)


def _pe_add_kernel(x_ref, pe_ref, o_ref):
    # x_ref: (TS, B*D) tile; pe_ref: (1, B*D) resident f32 addend.
    # Accumulate in f32 (matches PyTorch's promotion against the f32 pe buffer),
    # cast only at the store. Implicit broadcast -> no (TS, B*D) copy of pe.
    o_ref[...] = (x_ref[...].astype(jnp.float32) + pe_ref[...]).astype(o_ref.dtype)


def _tpu_generation_params():
    """Returns (tensorcores sharing the grid, target block bytes, vmem_limit_bytes)."""
    kind = ""
    try:
        kind = jax.devices()[0].device_kind.lower()
    except Exception:
        pass
    if "v7" in kind:
        # 2 TCs share the grid via "parallel"; 64 MiB physical VMEM -> cap the limit at 48 MiB.
        return 2, 6 << 20, 48 << 20
    if "v6" in kind:
        # Single TC, 128 MiB VMEM, ~1.4 TB/s HBM: 4 MiB blocks are ~86% of roofline.
        return 1, 4 << 20, 64 << 20
    # v5e / unknown: single TC, ~0.8 TB/s HBM -> 2 MiB blocks already ~roofline;
    # raise the scoped limit past the 16 MiB default so double buffers always fit.
    return 1, 2 << 20, 64 << 20


def _choose_tile_rows(n_rows: int, row_bytes: int, sublane_quantum: int,
                      num_cores: int, target_bytes: int) -> int:
    """Pick a seq-tile row count targeting ~target_bytes per block.

    Single-TC chips: no forced split -- one full-extent block when it fits the budget.
    Multi-TC (v7x): keep >=4 grid steps per core so prefetch/writeback stays pipelined.
    Rows are rounded to the dtype-aware sublane quantum unless the block covers the axis.
    """
    ts = max(1, target_bytes // max(row_bytes, 1))
    if num_cores > 1 and n_rows > 1:
        min_steps = 4 * num_cores
        ts = min(ts, max(1, n_rows // min_steps))
    ts = min(ts, n_rows)
    if ts < n_rows:
        ts = max(sublane_quantum, (ts // sublane_quantum) * sublane_quantum)
        ts = min(ts, n_rows)
    return ts


def positional_encoding_forward(x: jnp.ndarray, pe: jnp.ndarray,
                                *, target_tile_bytes: int | None = None) -> jnp.ndarray:
    """out = x + pe[:, :x.shape[0]]   (the add runs in the Pallas kernel)."""
    S, B, D = x.shape
    assert S <= pe.shape[1], "sequence longer than max_len of the pe buffer"
    # PyTorch broadcasting of (S, B, D) + (1, S, D) indexes pe by x's *second* axis and is
    # only shape-preserving when S == B -- literal module semantics.
    assert S == B, "broadcast requires x.size(0) == x.size(1) (as in the PyTorch module)"

    out_dtype = jnp.result_type(x.dtype, pe.dtype)     # f32 pe buffer -> matches torch promotion
    BD = B * D

    # Lane-dense 2-D views (contiguous reshapes). BD is the full last-axis extent, so the
    # BlockSpec is legal even when BD is not a 128-multiple (just masked edge stores then).
    x2 = x.reshape(S, BD)
    pe_row = pe[0, :S, :].astype(jnp.float32).reshape(1, BD)   # resident f32 addend row

    num_cores, target_bytes, vmem_limit = _tpu_generation_params()
    if target_tile_bytes is not None:
        target_bytes = target_tile_bytes

    in_item = jnp.dtype(x.dtype).itemsize
    out_item = jnp.dtype(out_dtype).itemsize
    row_bytes = BD * max(in_item, out_item)
    sublane_quantum = max(1, 32 // min(in_item, out_item))     # 8 f32, 16 bf16, 32 int8/fp8

    ts = _choose_tile_rows(S, row_bytes, sublane_quantum, num_cores, target_bytes)
    grid = (pl.cdiv(S, ts),)

    cost = pl.CostEstimate(
        flops=S * BD,
        transcendentals=0,
        bytes_accessed=S * BD * (in_item + out_item) + BD * 4,
    )

    out2 = pl.pallas_call(
        _pe_add_kernel,
        out_shape=jax.ShapeDtypeStruct((S, BD), out_dtype),
        grid=grid,
        in_specs=[
            pl.BlockSpec((ts, BD), lambda i: (i, 0)),    # big seq tiles of x
            pl.BlockSpec((1, BD), lambda i: (0, 0)),     # pe row resident across all steps
        ],
        out_specs=pl.BlockSpec((ts, BD), lambda i: (i, 0)),
        compiler_params=pltpu.CompilerParams(
            dimension_semantics=("parallel",),           # seq tiles are independent
            vmem_limit_bytes=vmem_limit,                 # room for 2x(in)+2x(out) buffers
        ),
        cost_estimate=cost,
    )(x2, pe_row)

    return out2.reshape(S, B, D)


if __name__ == "__main__":
    d_model = 32
    max_len = 128
    seq = 8
    batch = 8  # must equal seq for the PyTorch broadcast to be shape-preserving

    key = jax.random.PRNGKey(0)
    x = jax.random.normal(key, (seq, batch, d_model), dtype=jnp.float32)
    pe = make_pe_buffer(d_model, max_len)

    out = jax.block_until_ready(positional_encoding_forward(x, pe))

    # Pure-JAX reference of the exact PyTorch line: x + pe[:, :x.size(0)]
    ref = x + pe[:, : x.shape[0]]
    assert out.shape == ref.shape == (seq, batch, d_model)
    assert out.dtype == ref.dtype
    assert jnp.allclose(out, ref, atol=1e-6, rtol=1e-6)

    # Second check: bf16 input (sublane packing + f32 promotion like PyTorch), a forced
    # multi-step grid and a partial last block (24 rows, 16-row tiles).
    seq2 = batch2 = 24
    xb = jax.random.normal(jax.random.PRNGKey(1), (seq2, batch2, d_model)).astype(jnp.bfloat16)
    outb = jax.block_until_ready(positional_encoding_forward(xb, pe, target_tile_bytes=4096))
    refb = xb + pe[:, :seq2]                     # bf16 + f32 -> f32, same as torch
    assert outb.shape == refb.shape and outb.dtype == refb.dtype
    assert jnp.allclose(outb, refb, atol=1e-5, rtol=1e-5)

    print("KERNEL_OK")
</pallas_src>

<mosaic_0001>
module attributes {stable_mosaic.version = 11 : i64} {
  func.func @_pe_add_kernel(%arg0: i32, %arg1: memref<8x256xf32, #tpu.memory_space<vmem>>, %arg2: memref<1x256xf32, #tpu.memory_space<vmem>>, %arg3: memref<8x256xf32, #tpu.memory_space<vmem>>) attributes {dimension_semantics = [#tpu.dimension_semantics<parallel>], iteration_bounds = array<i64: 1>, scalar_prefetch = 0 : i64, scratch_operands = 0 : i64, tpu.core_type = #tpu.core_type<tc>, window_params = [{transform_indices = @transform_0, window_bounds = array<i64: 8, 256>}, {pipeline_mode = #tpu.pipeline_mode<synchronous>, transform_indices = @transform_1, window_bounds = array<i64: 1, 256>}, {transform_indices = @transform_2, window_bounds = array<i64: 8, 256>}]} {
    %c0 = arith.constant 0 : index
    %c0_0 = arith.constant 0 : index
    %0 = vector.load %arg1[%c0, %c0_0] : memref<8x256xf32, #tpu.memory_space<vmem>>, vector<8x256xf32>
    %c0_1 = arith.constant 0 : index
    %c0_2 = arith.constant 0 : index
    %1 = vector.load %arg2[%c0_1, %c0_2] : memref<1x256xf32, #tpu.memory_space<vmem>>, vector<1x256xf32>
    %2 = vector.broadcast %1 : vector<1x256xf32> to vector<8x256xf32>
    %3 = arith.addf %0, %2 : vector<8x256xf32>
    %c0_3 = arith.constant 0 : index
    %c0_4 = arith.constant 0 : index
    %4 = vector.load %arg3[%c0_3, %c0_4] : memref<8x256xf32, #tpu.memory_space<vmem>>, vector<8x256xf32>
    tpu.vector_store %arg3[%c0_3, %c0_4], %3 {strides = array<i32>} : memref<8x256xf32, #tpu.memory_space<vmem>>, vector<8x256xf32>,
    return
  }
  func.func @transform_0(%arg0: i32) -> (i32, i32) {
    %c0_i32 = arith.constant 0 : i32
    %c0_i32_0 = arith.constant 0 : i32
    return %arg0, %c0_i32 : i32, i32
  }
  func.func @transform_1(%arg0: i32) -> (i32, i32) {
    %c0_i32 = arith.constant 0 : i32
    %c0_i32_0 = arith.constant 0 : i32
    %c0_i32_1 = arith.constant 0 : i32
    return %c0_i32, %c0_i32_0 : i32, i32
  }
  func.func @transform_2(%arg0: i32) -> (i32, i32) {
    %c0_i32 = arith.constant 0 : i32
    %c0_i32_0 = arith.constant 0 : i32
    return %arg0, %c0_i32 : i32, i32
  }
}

</mosaic_0001>

<bundles_post_ra>
// kernel: tpu_custom_call.1
= control target key start
LH: loop header
LB: loop body
LE: loop exit
PB: predicated region body
PF: predicated region fallthrough
CT: control target
= control target key end

     0   :  { %7 = vsyncpa [#allocation3], 0  ;;  %s199_s0 = inlined_call_operand.hbm [shape: f32[8,256], index: 0, kind: input, shape index: {}]   ;;  %s200_s1 = inlined_call_operand.hbm [shape: f32[1,256], index: 1, kind: input, shape index: {}]   ;;  %s201_s2 = inlined_call_operand.hbm [shape: f32[8,256], index: 2, kind: output, shape index: {}]  }
   0x1   :  { %8 = vsyncpa [#allocation6], 0 }
   0x2   :  { %9 = vsyncpa [#allocation4], 0  ;;  %s145_s9 = smov [#allocation2]   ;;  %s146_s11 = smov [#allocation5]  }
   0x3   :  { %s16_s10 = sshll.u32 %s145_s9, 4  ;;  %s26_s12 = sshll.u32 %s146_s11, 4  ;;  %s17_s10 = int_to_ptr.vmem [resolvable:$true] %s16_s10  ;;  %s27_s12 = int_to_ptr.vmem [resolvable:$true] %s26_s12 }
   0x4   :  { %s73_s15 = scalar_lea.hbm %s199_s0, 256 }
   0x5   :  { %p74_p0 = scmp.ne.s32.totalorder %s199_s0, %s73_s15  ;;  %p77_p1 = scmp.lt.u32.totalorder %s73_s15, %s199_s0 }
   0x7   :  { %p79_p2 = pnand %p77_p1, %p74_p0 }
   0x9   :  { %82 = shalt.err (!%p79_p2)
}
   0xa   :  { %s83_s20 = scalar_lea.vmem %s17_s10, 256  ;;  %p88_p4 = scmp.lt.s32.totalorder %s17_s10, %s17_s10 }
   0xb   :  { %p84_p3 = scmp.ne.s32.totalorder %s17_s10, %s83_s20  ;;  %p89_p5 = scmp.lt.s32.totalorder %s83_s20, %s83_s20 }
   0xd   :  { %p90_p6 = por %p89_p5, %p88_p4 }
   0xf   :  { %p91_p7 = pnand %p90_p6, %p84_p3 }
  0x11   :  { %94 = shalt.err (!%p91_p7)
}
  0x12   :  { %19 = dma.hbm_to_vmem [thread:$0]  %s199_s0, 256, %s17_s10, [#allocation3]  }
  0x13   :  { %s95_s25 = scalar_lea.hbm %s200_s1, 32 }
  0x14   :  { %p96_p8 = scmp.ne.s32.totalorder %s200_s1, %s95_s25  ;;  %p99_p9 = scmp.lt.u32.totalorder %s95_s25, %s200_s1 }
  0x16   :  { %p101_p10 = pnand %p99_p9, %p96_p8 }
  0x18   :  { %104 = shalt.err (!%p101_p10)
}
  0x19   :  { %s105_s30 = scalar_lea.vmem %s27_s12, 32  ;;  %p110_p12 = scmp.lt.s32.totalorder %s27_s12, %s27_s12 }
  0x1a   :  { %p106_p11 = scmp.ne.s32.totalorder %s27_s12, %s105_s30  ;;  %p111_p13 = scmp.lt.s32.totalorder %s105_s30, %s105_s30 }
  0x1c   :  { %p112_p0 = por %p111_p13, %p110_p12 }
  0x1e   :  { %p113_p1 = pnand %p112_p0, %p106_p11 }
  0x20   :  { %116 = shalt.err (!%p113_p1)
}
  0x21   :  { %29 = dma.hbm_to_vmem [thread:$0]  %s200_s1, 32, %s27_s12, [#allocation6]  }
  0x22   :  { %139 = dma.done.wait [#allocation3], 256  }
  0x23   :  { %140 = vsyncadd [#allocation3], 4294967040 }
  0x24   :  { %141 = dma.done.wait [#allocation6], 32  }
  0x25   :  { %142 = vsyncadd [#allocation6], 4294967264  ;;  %v40_v0 = vlaneseq  ;;  %v36_v4 = vld [vmem:[#allocation2] sm:$0xff]  ;;  %v38_v5 = vld [vmem:[#allocation5] sm:$0x3]  ;;  %s147_s4 = smov [#allocation7]  }
  0x26   :  { %v37_v6 = vld [vmem:[#allocation2 + $0x8] sm:$0xff]  ;;  %s60_s5 = sshll.u32 %s147_s4, 4  ;;  %s61_s5 = int_to_ptr.vmem [resolvable:$true] %s60_s5 }
  0x27   :  { %v41_v1 = vshrl.u32 %v40_v0, 7  ;;  %s117_s1 = scalar_lea.vmem %s61_s5, 256  ;;  %p122_p3 = scmp.lt.s32.totalorder %s61_s5, %s61_s5 }
  0x28   :  { %p118_p2 = scmp.ne.s32.totalorder %s61_s5, %s117_s1  ;;  %p123_p4 = scmp.lt.s32.totalorder %s117_s1, %s117_s1 }
  0x29   :  { %v42_v2 = vsub.s32 0, %v41_v1  ;;  %v46_v3 = vsub.s32 1, %v41_v1 }
  0x2a   :  { %p124_p5 = por %p123_p4, %p122_p3 }
  0x2b   :  { %v43_v7 = vrot.slane %v38_v5, %v42_v2  ;;  %v47_v8 = vrot.slane %v38_v5, %v46_v3 }
  0x2c   :  { %p125_p6 = pnand %p124_p5, %p118_p2 }
  0x2d   :  { %v50_v9 = vadd.f32 %v43_v7, %v36_v4  ;;  %v51_v10 = vadd.f32 %v47_v8, %v37_v6 }
  0x2f   :  { %52 = vst [vmem:[#allocation7] sm:$0xff] %v50_v9  ;;  %53 = vst [vmem:[#allocation7 + $0x8] sm:$0xff] %v51_v10 }
  0x30   :  { %128 = shalt.err (!%p125_p6)
}
  0x31   :  { %s129_s8 = scalar_lea.hbm %s201_s2, 256 }
  0x32   :  { %p130_p7 = scmp.ne.s32.totalorder %s201_s2, %s129_s8  ;;  %p133_p8 = scmp.lt.u32.totalorder %s129_s8, %s201_s2 }
  0x34   :  { %p135_p9 = pnand %p133_p8, %p130_p7 }
  0x36   :  { %138 = shalt.err (!%p135_p9)
}
  0x37   :  { %63 = dma.vmem_to_hbm [thread:$0]  %s61_s5, 256, %s201_s2, [#allocation4]  }
  0x38   :  { %143 = dma.done.wait [#allocation4], 256  }
  0x39   :  { %144 = vsyncadd [#allocation4], 4294967040 }
  0x3a   :  { %67 = vsyncpa [#allocation3], 1 }
  0x3b   :  { %68 = vsyncpa [#allocation6], 1 }
  0x3c   :  { %69 = vsyncpa [#allocation4], 1 }

</bundles_post_ra>
